<compile_context>
chip_gen: v6e
topology: v6e:2x2x1
jax: 0.10.0
libtpu: 0.0.40
codegen_flags: <defaults>
</compile_context>

<pallas_src>
import functools

import jax
import jax.numpy as jnp
from jax.experimental import pallas as pl
from jax.experimental.pallas import tpu as pltpu


def _round_up(v, m):
    return -(-v // m) * m


def _padded_bytes(rows, cols, itemsize):
    sub = 8 * (4 // itemsize)            # 8 sublanes f32, 16 bf16
    return _round_up(rows, sub) * _round_up(cols, 128) * itemsize


def _encoder_kernel(*refs, use_mask):
    if use_mask:
        (xt_ref, at_ref, pat_ref, dinv_ref, dinvt_ref, w1t_ref, b1_ref,
         w2t_ref, b2_ref, cnt_ref, mask_ref, out_ref, t1_ref, acc_ref) = refs
    else:
        (xt_ref, at_ref, pat_ref, dinv_ref, dinvt_ref, w1t_ref, b1_ref,
         w2t_ref, b2_ref, cnt_ref, out_ref, t1_ref, acc_ref) = refs
        mask_ref = None

    j = pl.program_id(0)

    @pl.when(j == 0)
    def _():
        # t1s = (W1^T X^T) * dinv_src  -- A-independent, computed once, kept resident.
        t1_ref[...] = (jnp.dot(w1t_ref[...], xt_ref[...],
                               preferred_element_type=jnp.float32)
                       * dinv_ref[...])
        # Pooled layer-2 bias:  out = b2 (x) counts.
        acc_ref[...] = b2_ref[...] * cnt_ref[...]

    # ---- GCN layer 1 for this tile of destination nodes (nodes on the lane axis) ----
    a_tile = at_ref[...].astype(jnp.float32)      # bf16 HBM transport -> f32 MXU operand
    h = (jnp.dot(t1_ref[...], a_tile, preferred_element_type=jnp.float32)
         * dinvt_ref[...] + b1_ref[...])          # [hidden, TILE_N]
    h = jnp.maximum(h, 0.0)                       # ReLU
    if use_mask:
        h = h * mask_ref[...]                     # inverted dropout (pre-scaled mask)

    # ---- GCN layer 2 + per-graph sum pooling folded:  acc += (W2^T H^T_tile) @ pat_tile
    t2 = jnp.dot(w2t_ref[...], h, preferred_element_type=jnp.float32)   # [out_dim, TILE_N]
    acc_ref[...] += jnp.dot(t2, pat_ref[...], preferred_element_type=jnp.float32)
    out_ref[...] = acc_ref[...]


@functools.partial(jax.jit, static_argnames=("num_graphs", "training", "drop_p"))
def space_time_element_encoder(x, edge_index, batch, params, num_graphs,
                               training=False, drop_p=0.5, seed=0):
    """x: [N, in_dim] f32, edge_index: [2, E] int32 (row 0 = src, row 1 = dst),
    batch: [N] int32 graph ids, num_graphs: static int.
    Returns [num_graphs, output_dim] f32."""
    n, in_dim = x.shape
    w1, b1, w2, b2 = params
    hidden = w1.shape[1]
    out_dim = w2.shape[1]
    g = int(num_graphs)
    use_mask = bool(training) and float(drop_p) > 0.0

    # ---- VMEM budget from the actual device (v7x: 64 MiB/TC; v5e/v6e: 128 MiB) ----
    try:
        vmem_cap = int(pltpu.get_tpu_info().vmem_capacity_bytes)
    except Exception:
        vmem_cap = 64 << 20
    budget = (vmem_cap * 3) // 4

    # ---- destination-node tile (lane axis): multiple of 128, sized to the budget ----
    if n <= 512:
        tile_n = n                              # single full-dim tile
    else:
        tile_n = 512
        while tile_n > 128:
            npad_t = _round_up(n, tile_n)
            est = (2 * _padded_bytes(npad_t, tile_n, 2)   # double-buffered bf16 A tile
                   + _padded_bytes(npad_t, tile_n, 4)     # f32 upcast fed to the MXU
                   + _padded_bytes(hidden, npad_t, 4)     # resident t1 scratch
                   + (8 << 20))
            if est <= budget:
                break
            tile_n //= 2
    n_pad = n if n <= 512 else _round_up(n, tile_n)
    num_tiles = n_pad // tile_n

    src = edge_index[0]
    dst = edge_index[1]

    # ---- transposed, UNNORMALIZED adjacency with self loops (0/1 -> exact in bf16) ----
    at = jnp.zeros((n_pad, n_pad), jnp.float32).at[src, dst].add(1.0)   # At[j,i]=(A+I)[i,j]
    at = (at + jnp.eye(n_pad, dtype=jnp.float32)).astype(jnp.bfloat16)

    # ---- D^{-1/2} straight from the edge list (no N^2 normalization pass) ----
    deg = jnp.zeros((n_pad,), jnp.float32).at[dst].add(1.0) + 1.0       # in-deg + self loop
    dinv = jnp.where(jnp.arange(n_pad) < n, jax.lax.rsqrt(deg), 0.0)

    # ---- pooling fold  pat = A_hat^T P^T  via segment sums, O(E + N*G) ----
    batch_pad = jnp.full((n_pad,), -1, jnp.int32).at[:n].set(batch.astype(jnp.int32))
    pool_t = (batch_pad[:, None] == jnp.arange(g)[None, :]).astype(jnp.float32)  # [N, G]
    pat = jnp.zeros((n_pad, g), jnp.float32).at[src, batch[dst]].add(dinv[dst])
    pat = (pat + dinv[:, None] * pool_t) * dinv[:, None]                # [N, G]
    counts = jnp.sum(pool_t, axis=0).reshape(1, g)

    # ---- small resident operands (all f32; A^T is the only large HBM stream) ----
    xt = jnp.zeros((in_dim, n_pad), jnp.float32).at[:, :n].set(x.astype(jnp.float32).T)
    dinv_row = dinv.reshape(1, n_pad)
    w1t = w1.astype(jnp.float32).T
    w2t = w2.astype(jnp.float32).T
    b1c = b1.astype(jnp.float32).reshape(hidden, 1)
    b2c = b2.astype(jnp.float32).reshape(out_dim, 1)

    const = lambda shape: pl.BlockSpec(shape, lambda j: (0, 0))
    in_specs = [
        const((in_dim, n_pad)),                                   # x^T        (resident)
        pl.BlockSpec((n_pad, tile_n), lambda j: (0, j)),          # A^T tile   (streamed)
        pl.BlockSpec((tile_n, g), lambda j: (j, 0)),              # pat tile   (streamed)
        const((1, n_pad)),                                        # dinv (source side)
        pl.BlockSpec((1, tile_n), lambda j: (0, j)),              # dinv (dest-side tile)
        const((hidden, in_dim)),                                  # W1^T
        const((hidden, 1)),                                       # b1
        const((out_dim, hidden)),                                 # W2^T
        const((out_dim, 1)),                                      # b2
        const((1, g)),                                            # counts
    ]
    args = [xt, at, pat, dinv_row, dinv_row, w1t, b1c, w2t, b2c, counts]

    if use_mask:
        if float(drop_p) >= 1.0:
            mask = jnp.zeros((hidden, n_pad), jnp.float32)
        else:
            keep = jax.random.bernoulli(jax.random.PRNGKey(seed),
                                        1.0 - float(drop_p), (hidden, n_pad))
            mask = keep.astype(jnp.float32) * (1.0 / (1.0 - float(drop_p)))
        in_specs.append(pl.BlockSpec((hidden, tile_n), lambda j: (0, j)))
        args.append(mask)

    # ---- VMEM ask: streamed tiles (double-buffered) + residents, capped by device ----
    streamed = (2 * _padded_bytes(n_pad, tile_n, 2)
                + _padded_bytes(n_pad, tile_n, 4)
                + 2 * _padded_bytes(tile_n, g, 4))
    if use_mask:
        streamed += 2 * _padded_bytes(hidden, tile_n, 4)
    resident = (_padded_bytes(in_dim, n_pad, 4) + 2 * _padded_bytes(1, n_pad, 4)
                + 2 * _padded_bytes(1, tile_n, 4) + _padded_bytes(hidden, in_dim, 4)
                + _padded_bytes(hidden, 1, 4) + _padded_bytes(out_dim, hidden, 4)
                + _padded_bytes(out_dim, 1, 4) + 2 * _padded_bytes(1, g, 4)
                + _padded_bytes(hidden, n_pad, 4) + 3 * _padded_bytes(out_dim, g, 4)
                + _padded_bytes(hidden, tile_n, 4) + _padded_bytes(out_dim, tile_n, 4))
    vmem_limit = int(min(max(streamed + resident + (4 << 20), 16 << 20), budget))

    flops = int(2 * hidden * n_pad * n_pad + 2 * in_dim * hidden * n_pad
                + 2 * out_dim * hidden * n_pad + 2 * out_dim * n_pad * g)
    bytes_accessed = int(2 * n_pad * n_pad + 4 * n_pad * (in_dim + g + 2)
                         + (4 * hidden * n_pad if use_mask else 0)
                         + 4 * (in_dim * hidden + hidden * out_dim + hidden
                                + out_dim + g + out_dim * g))

    kernel = functools.partial(_encoder_kernel, use_mask=use_mask)

    # TODO(synk): exploit A_hat's per-graph block-diagonal structure (PrefetchScalarGridSpec
    # with per-graph node offsets) to cut A traffic from N^2 to sum_g n_g^2, and add a
    # leading "parallel" grid axis with per-core partial accumulators for v7x's 2 TCs.
    out_t = pl.pallas_call(
        kernel,
        out_shape=jax.ShapeDtypeStruct((out_dim, g), jnp.float32),
        grid=(num_tiles,),
        in_specs=in_specs,
        out_specs=pl.BlockSpec((out_dim, g), lambda j: (0, 0)),
        scratch_shapes=[pltpu.VMEM((hidden, n_pad), jnp.float32),   # t1s (resident)
                        pltpu.VMEM((out_dim, g), jnp.float32)],     # accumulator
        compiler_params=pltpu.CompilerParams(
            dimension_semantics=("arbitrary",),
            vmem_limit_bytes=vmem_limit),
        cost_estimate=pl.CostEstimate(flops=flops, transcendentals=0,
                                      bytes_accessed=bytes_accessed),
    )(*args)

    return out_t.T                                                 # [num_graphs, out_dim]


def _reference(x, edge_index, batch, params, num_graphs):
    """Pure-JAX f32 reference of the forward pass (training=False)."""
    n = x.shape[0]
    w1, b1, w2, b2 = params
    adj = jnp.zeros((n, n), jnp.float32).at[edge_index[1], edge_index[0]].add(1.0)
    adj = adj + jnp.eye(n, dtype=jnp.float32)
    deg = jnp.sum(adj, axis=1)
    dinv = jnp.where(deg > 0, 1.0 / jnp.sqrt(deg), 0.0)
    a = dinv[:, None] * adj * dinv[None, :]
    h = jnp.maximum(a @ (x @ w1) + b1, 0.0)
    h2 = a @ (h @ w2) + b2
    pool = (jnp.arange(num_graphs)[:, None] == batch[None, :]).astype(jnp.float32)
    return pool @ h2


if __name__ == "__main__":
    input_dim, hidden, output_dim = 4, 16, 8
    n_nodes, n_graphs = 16, 2                      # 8 nodes per graph

    key = jax.random.PRNGKey(0)
    k_x, k_w1, k_b1, k_w2, k_b2 = jax.random.split(key, 5)

    x = jax.random.normal(k_x, (n_nodes, input_dim), dtype=jnp.float32)

    # deterministic parameters (GCNConv: weight [in, out], bias [out])
    w1 = jax.random.normal(k_w1, (input_dim, hidden), dtype=jnp.float32) * 0.5
    b1 = jax.random.normal(k_b1, (hidden,), dtype=jnp.float32) * 0.1
    w2 = jax.random.normal(k_w2, (hidden, output_dim), dtype=jnp.float32) * 0.5
    b2 = jax.random.normal(k_b2, (output_dim,), dtype=jnp.float32) * 0.1
    params = (w1, b1, w2, b2)

    # deterministic edges: bidirectional ring within each graph of 8 nodes
    src, dst = [], []
    per_graph = n_nodes // n_graphs
    for gidx in range(n_graphs):
        base = gidx * per_graph
        for i in range(per_graph):
            a_, b_ = base + i, base + (i + 1) % per_graph
            src += [a_, b_]
            dst += [b_, a_]
    edge_index = jnp.array([src, dst], dtype=jnp.int32)
    batch = jnp.array([gidx for gidx in range(n_graphs) for _ in range(per_graph)],
                      dtype=jnp.int32)

    # eval path: dropout is identity (matches F.dropout(training=False))
    out = space_time_element_encoder(x, edge_index, batch, params,
                                     num_graphs=n_graphs, training=False)
    out = jax.block_until_ready(out)

    ref = _reference(x, edge_index, batch, params, n_graphs)
    assert out.shape == (n_graphs, output_dim)
    assert jnp.allclose(out, ref, rtol=1e-3, atol=1e-3), \
        float(jnp.max(jnp.abs(out - ref)))

    # training path smoke test (exercises the streamed dropout-mask path)
    out_tr = space_time_element_encoder(x, edge_index, batch, params,
                                        num_graphs=n_graphs, training=True,
                                        drop_p=0.5, seed=123)
    out_tr = jax.block_until_ready(out_tr)
    assert out_tr.shape == (n_graphs, output_dim)
    assert bool(jnp.all(jnp.isfinite(out_tr)))

    print("KERNEL_OK")
</pallas_src>

<mosaic_0001>
module attributes {stable_mosaic.version = 11 : i64} {
  func.func private @main(%arg0: i32) attributes {dimension_semantics = [#tpu.dimension_semantics<core_parallel>], iteration_bounds = array<i64: 2>, tpu.core_type = #tpu.core_type<sc_scalar_subcore>, window_params = []} {
    return
  }
}

module attributes {stable_mosaic.version = 11 : i64} {
  func.func private @main(%arg0: i32) attributes {dimension_semantics = [#tpu.dimension_semantics<core_parallel>], iteration_bounds = array<i64: 2>, tpu.core_type = #tpu.core_type<sc_scalar_subcore>, window_params = []} {
    return
  }
}

module attributes {stable_mosaic.version = 11 : i64} {
  func.func @_encoder_kernel(%arg0: i32, %arg1: memref<4x16xf32, #tpu.memory_space<vmem>>, %arg2: memref<16x16xbf16, #tpu.memory_space<vmem>>, %arg3: memref<16x2xf32, #tpu.memory_space<vmem>>, %arg4: memref<1x16xf32, #tpu.memory_space<vmem>>, %arg5: memref<1x16xf32, #tpu.memory_space<vmem>>, %arg6: memref<16x4xf32, #tpu.memory_space<vmem>>, %arg7: memref<16x1xf32, #tpu.memory_space<vmem>>, %arg8: memref<8x16xf32, #tpu.memory_space<vmem>>, %arg9: memref<8x1xf32, #tpu.memory_space<vmem>>, %arg10: memref<1x2xf32, #tpu.memory_space<vmem>>, %arg11: memref<8x2xf32, #tpu.memory_space<vmem>>, %arg12: memref<16x16xf32, #tpu.memory_space<vmem>>, %arg13: memref<8x2xf32, #tpu.memory_space<vmem>>) attributes {dimension_semantics = [#tpu.dimension_semantics<arbitrary>], iteration_bounds = array<i64: 1>, scalar_prefetch = 0 : i64, scratch_operands = 2 : i64, tpu.core_type = #tpu.core_type<tc>, window_params = [{pipeline_mode = #tpu.pipeline_mode<synchronous>, transform_indices = @transform_0, window_bounds = array<i64: 4, 16>}, {transform_indices = @transform_1, window_bounds = array<i64: 16, 16>}, {transform_indices = @transform_2, window_bounds = array<i64: 16, 2>}, {pipeline_mode = #tpu.pipeline_mode<synchronous>, transform_indices = @transform_3, window_bounds = array<i64: 1, 16>}, {transform_indices = @transform_4, window_bounds = array<i64: 1, 16>}, {pipeline_mode = #tpu.pipeline_mode<synchronous>, transform_indices = @transform_5, window_bounds = array<i64: 16, 4>}, {pipeline_mode = #tpu.pipeline_mode<synchronous>, transform_indices = @transform_6, window_bounds = array<i64: 16, 1>}, {pipeline_mode = #tpu.pipeline_mode<synchronous>, transform_indices = @transform_7, window_bounds = array<i64: 8, 16>}, {pipeline_mode = #tpu.pipeline_mode<synchronous>, transform_indices = @transform_8, window_bounds = array<i64: 8, 1>}, {pipeline_mode = #tpu.pipeline_mode<synchronous>, transform_indices = @transform_9, window_bounds = array<i64: 1, 2>}, {pipeline_mode = #tpu.pipeline_mode<synchronous>, transform_indices = @transform_10, window_bounds = array<i64: 8, 2>}]} {
    %c0_i32 = arith.constant 0 : i32
    %0 = arith.cmpi eq, %arg0, %c0_i32 : i32
    %1 = arith.extui %0 : i1 to i32
    %c0_i32_0 = arith.constant 0 : i32
    %2 = arith.cmpi ne, %1, %c0_i32_0 : i32
    scf.if %2 {
      %c0_23 = arith.constant 0 : index
      %c0_24 = arith.constant 0 : index
      %24 = vector.load %arg6[%c0_23, %c0_24] : memref<16x4xf32, #tpu.memory_space<vmem>>, vector<16x4xf32>
      %c0_25 = arith.constant 0 : index
      %c0_26 = arith.constant 0 : index
      %25 = vector.load %arg1[%c0_25, %c0_26] : memref<4x16xf32, #tpu.memory_space<vmem>>, vector<4x16xf32>
      %cst_27 = arith.constant dense<0.000000e+00> : vector<16x16xf32>
      %26 = tpu.matmul %24, %25, %cst_27 {dimension_numbers = #tpu.dot_dimension_numbers<[1], [0], [0], [1], [0, 0, 1, 1], [], []>} : vector<16x4xf32>, vector<4x16xf32>, vector<16x16xf32> -> vector<16x16xf32>
      %c0_28 = arith.constant 0 : index
      %c0_29 = arith.constant 0 : index
      %27 = vector.load %arg4[%c0_28, %c0_29] : memref<1x16xf32, #tpu.memory_space<vmem>>, vector<1x16xf32>
      %28 = vector.broadcast %27 : vector<1x16xf32> to vector<16x16xf32>
      %29 = arith.mulf %26, %28 : vector<16x16xf32>
      %c0_30 = arith.constant 0 : index
      %c0_31 = arith.constant 0 : index
      %30 = vector.load %arg12[%c0_30, %c0_31] : memref<16x16xf32, #tpu.memory_space<vmem>>, vector<16x16xf32>
      tpu.vector_store %arg12[%c0_30, %c0_31], %29 {strides = array<i32>} : memref<16x16xf32, #tpu.memory_space<vmem>>, vector<16x16xf32>,
      %c0_32 = arith.constant 0 : index
      %c0_33 = arith.constant 0 : index
      %31 = vector.load %arg9[%c0_32, %c0_33] : memref<8x1xf32, #tpu.memory_space<vmem>>, vector<8x1xf32>
      %c0_34 = arith.constant 0 : index
      %c0_35 = arith.constant 0 : index
      %32 = vector.load %arg10[%c0_34, %c0_35] : memref<1x2xf32, #tpu.memory_space<vmem>>, vector<1x2xf32>
      %33 = vector.broadcast %31 : vector<8x1xf32> to vector<8x2xf32>
      %34 = vector.broadcast %32 : vector<1x2xf32> to vector<8x2xf32>
      %35 = arith.mulf %33, %34 : vector<8x2xf32>
      %c0_36 = arith.constant 0 : index
      %c0_37 = arith.constant 0 : index
      %36 = vector.load %arg13[%c0_36, %c0_37] : memref<8x2xf32, #tpu.memory_space<vmem>>, vector<8x2xf32>
      tpu.vector_store %arg13[%c0_36, %c0_37], %35 {strides = array<i32>} : memref<8x2xf32, #tpu.memory_space<vmem>>, vector<8x2xf32>,
    } else {
    }
    %c0 = arith.constant 0 : index
    %c0_1 = arith.constant 0 : index
    %3 = vector.load %arg2[%c0, %c0_1] : memref<16x16xbf16, #tpu.memory_space<vmem>>, vector<16x16xbf16>
    %4 = arith.extf %3 : vector<16x16xbf16> to vector<16x16xf32>
    %c0_2 = arith.constant 0 : index
    %c0_3 = arith.constant 0 : index
    %5 = vector.load %arg12[%c0_2, %c0_3] : memref<16x16xf32, #tpu.memory_space<vmem>>, vector<16x16xf32>
    %cst = arith.constant dense<0.000000e+00> : vector<16x16xf32>
    %6 = tpu.matmul %5, %4, %cst {dimension_numbers = #tpu.dot_dimension_numbers<[1], [0], [0], [1], [0, 0, 1, 1], [], []>} : vector<16x16xf32>, vector<16x16xf32>, vector<16x16xf32> -> vector<16x16xf32>
    %c0_4 = arith.constant 0 : index
    %c0_5 = arith.constant 0 : index
    %7 = vector.load %arg5[%c0_4, %c0_5] : memref<1x16xf32, #tpu.memory_space<vmem>>, vector<1x16xf32>
    %8 = vector.broadcast %7 : vector<1x16xf32> to vector<16x16xf32>
    %9 = arith.mulf %6, %8 : vector<16x16xf32>
    %c0_6 = arith.constant 0 : index
    %c0_7 = arith.constant 0 : index
    %10 = vector.load %arg7[%c0_6, %c0_7] : memref<16x1xf32, #tpu.memory_space<vmem>>, vector<16x1xf32>
    %11 = vector.broadcast %10 : vector<16x1xf32> to vector<16x16xf32>
    %12 = arith.addf %9, %11 : vector<16x16xf32>
    %cst_8 = arith.constant 0.000000e+00 : f32
    %13 = vector.broadcast %cst_8 : f32 to vector<16x16xf32>
    %14 = arith.maximumf %12, %13 : vector<16x16xf32>
    %c0_9 = arith.constant 0 : index
    %c0_10 = arith.constant 0 : index
    %15 = vector.load %arg8[%c0_9, %c0_10] : memref<8x16xf32, #tpu.memory_space<vmem>>, vector<8x16xf32>
    %cst_11 = arith.constant dense<0.000000e+00> : vector<8x16xf32>
    %16 = tpu.matmul %15, %14, %cst_11 {dimension_numbers = #tpu.dot_dimension_numbers<[1], [0], [0], [1], [0, 0, 1, 1], [], []>} : vector<8x16xf32>, vector<16x16xf32>, vector<8x16xf32> -> vector<8x16xf32>
    %c0_12 = arith.constant 0 : index
    %c0_13 = arith.constant 0 : index
    %17 = vector.load %arg13[%c0_12, %c0_13] : memref<8x2xf32, #tpu.memory_space<vmem>>, vector<8x2xf32>
    %c0_14 = arith.constant 0 : index
    %c0_15 = arith.constant 0 : index
    %18 = vector.load %arg3[%c0_14, %c0_15] : memref<16x2xf32, #tpu.memory_space<vmem>>, vector<16x2xf32>
    %cst_16 = arith.constant dense<0.000000e+00> : vector<8x2xf32>
    %19 = tpu.matmul %16, %18, %cst_16 {dimension_numbers = #tpu.dot_dimension_numbers<[1], [0], [0], [1], [0, 0, 1, 1], [], []>} : vector<8x16xf32>, vector<16x2xf32>, vector<8x2xf32> -> vector<8x2xf32>
    %20 = arith.addf %17, %19 : vector<8x2xf32>
    %c0_17 = arith.constant 0 : index
    %c0_18 = arith.constant 0 : index
    %21 = vector.load %arg13[%c0_17, %c0_18] : memref<8x2xf32, #tpu.memory_space<vmem>>, vector<8x2xf32>
    tpu.vector_store %arg13[%c0_17, %c0_18], %20 {strides = array<i32>} : memref<8x2xf32, #tpu.memory_space<vmem>>, vector<8x2xf32>,
    %c0_19 = arith.constant 0 : index
    %c0_20 = arith.constant 0 : index
    %22 = vector.load %arg13[%c0_19, %c0_20] : memref<8x2xf32, #tpu.memory_space<vmem>>, vector<8x2xf32>
    %c0_21 = arith.constant 0 : index
    %c0_22 = arith.constant 0 : index
    %23 = vector.load %arg11[%c0_21, %c0_22] : memref<8x2xf32, #tpu.memory_space<vmem>>, vector<8x2xf32>
    tpu.vector_store %arg11[%c0_21, %c0_22], %22 {strides = array<i32>} : memref<8x2xf32, #tpu.memory_space<vmem>>, vector<8x2xf32>,
    return
  }
  func.func @transform_0(%arg0: i32) -> (i32, i32) {
    %c0_i32 = arith.constant 0 : i32
    %c0_i32_0 = arith.constant 0 : i32
    %c0_i32_1 = arith.constant 0 : i32
    return %c0_i32, %c0_i32_0 : i32, i32
  }
  func.func @transform_1(%arg0: i32) -> (i32, i32) {
    %c0_i32 = arith.constant 0 : i32
    %c0_i32_0 = arith.constant 0 : i32
    return %c0_i32, %arg0 : i32, i32
  }
  func.func @transform_2(%arg0: i32) -> (i32, i32) {
    %c0_i32 = arith.constant 0 : i32
    %c0_i32_0 = arith.constant 0 : i32
    return %arg0, %c0_i32 : i32, i32
  }
  func.func @transform_3(%arg0: i32) -> (i32, i32) {
    %c0_i32 = arith.constant 0 : i32
    %c0_i32_0 = arith.constant 0 : i32
    %c0_i32_1 = arith.constant 0 : i32
    return %c0_i32, %c0_i32_0 : i32, i32
  }
  func.func @transform_4(%arg0: i32) -> (i32, i32) {
    %c0_i32 = arith.constant 0 : i32
    %c0_i32_0 = arith.constant 0 : i32
    return %c0_i32, %arg0 : i32, i32
  }
  func.func @transform_5(%arg0: i32) -> (i32, i32) {
    %c0_i32 = arith.constant 0 : i32
    %c0_i32_0 = arith.constant 0 : i32
    %c0_i32_1 = arith.constant 0 : i32
    return %c0_i32, %c0_i32_0 : i32, i32
  }
  func.func @transform_6(%arg0: i32) -> (i32, i32) {
    %c0_i32 = arith.constant 0 : i32
    %c0_i32_0 = arith.constant 0 : i32
    %c0_i32_1 = arith.constant 0 : i32
    return %c0_i32, %c0_i32_0 : i32, i32
  }
  func.func @transform_7(%arg0: i32) -> (i32, i32) {
    %c0_i32 = arith.constant 0 : i32
    %c0_i32_0 = arith.constant 0 : i32
    %c0_i32_1 = arith.constant 0 : i32
    return %c0_i32, %c0_i32_0 : i32, i32
  }
  func.func @transform_8(%arg0: i32) -> (i32, i32) {
    %c0_i32 = arith.constant 0 : i32
    %c0_i32_0 = arith.constant 0 : i32
    %c0_i32_1 = arith.constant 0 : i32
    return %c0_i32, %c0_i32_0 : i32, i32
  }
  func.func @transform_9(%arg0: i32) -> (i32, i32) {
    %c0_i32 = arith.constant 0 : i32
    %c0_i32_0 = arith.constant 0 : i32
    %c0_i32_1 = arith.constant 0 : i32
    return %c0_i32, %c0_i32_0 : i32, i32
  }
  func.func @transform_10(%arg0: i32) -> (i32, i32) {
    %c0_i32 = arith.constant 0 : i32
    %c0_i32_0 = arith.constant 0 : i32
    %c0_i32_1 = arith.constant 0 : i32
    return %c0_i32, %c0_i32_0 : i32, i32
  }
}

</mosaic_0001>

<bundles_post_ra>
// kernel: space_time_element_encoder.1
= control target key start
LH: loop header
LB: loop body
LE: loop exit
PB: predicated region body
PF: predicated region fallthrough
CT: control target
= control target key end

     0   :  { %vm49_vm0 = vcmask 1043456   ;;  %vm42_vm1 = vcmask 31744   ;;  %v486_v6 = vmov 0   ;;  %vm137_vm2 = vcmask 130048   ;;  %s592_s0 = inlined_call_operand.vmem [shape: f32[4,16], index: 0, kind: input, shape index: {}]   ;;  %s593_s5 = inlined_call_operand.vmem [shape: f32[16,4], index: 5, kind: input, shape index: {}]   ;;  %s594_s1 = inlined_call_operand.vmem [shape: bf16[16,16], index: 1, kind: input, shape index: {}]   ;;  %s595_s6 = inlined_call_operand.vmem [shape: f32[16,1], index: 6, kind: input, shape index: {}]   ;;  %s596_s3 = inlined_call_operand.vmem [shape: f32[1,16], index: 3, kind: input, shape index: {}, may-alias: {3,4}]   ;;  %s597_s2 = inlined_call_operand.vmem [shape: f32[16,2], index: 2, kind: input, shape index: {}]   ;;  %s598_s4 = inlined_call_operand.vmem [shape: f32[1,16], index: 4, kind: input, shape index: {}, may-alias: {3,4}]   ;;  %s599_s7 = inlined_call_operand.vmem [shape: f32[8,16], index: 7, kind: input, shape index: {}]   ;;  %s600_s8 = inlined_call_operand.vmem [shape: f32[8,1], index: 8, kind: input, shape index: {}]   ;;  %s601_s9 = inlined_call_operand.vmem [shape: f32[1,2], index: 9, kind: input, shape index: {}]   ;;  %s602_s10 = inlined_call_operand.vmem [shape: f32[8,2], index: 10, kind: output, shape index: {}]  }
   0x1   :  { %v41_v0 = vld [vmem:[%s592_s0] sm:$0xf]  ;;  %v40_v2 = vld [vmem:[%s593_s5 + $0x8] sm:$0xff]  ;;  %484 = vset.pattern.permute.xlu0 %v486_v6  ;;  %485 = vset.pattern.permute.xlu1 %v486_v6  ;;  %v487_v16 = vmov 0.0   ;;  %vm488_vm3 = vmmov 0   ;;  %vm154_vm4 = vcmask 15360  }
   0x2   :  { %v39_v1 = vld [vmem:[%s593_s5] sm:$0xff]  ;;  %455 = vmatprep.subr.msk.mxu0 %vm49_vm0, %v41_v0  ;;  %v254_v7 = vld [vmem:[%s595_s6 + $0x8] sm:$0xff] }
   0x3   :  { %457 = vmatprep.mubr.msk.f32.mxu0 %vm42_vm1, %v39_v1  ;;  %456 = vmatpush3.msk.msra.mxu0 %vm49_vm0, %v41_v0  ;;  %v439_v3 = vld [vmem:[%s594_s1] sm:$0xff]   ;;  %v345_v17 = vld [vmem:[%s597_s2 + $0x8] sm:$0xff] }
   0x4   :  { %458 = vmatmul.mubr.msk.f32.vlgmr.msra.gmra.mxu0 %vm42_vm1, %v40_v2  ;;  %v440_v4 = vunpack.c.l.bf16 %v439_v3  ;;  %v441_v5 = vunpack.c.h.bf16 %v439_v3  ;;  %262 = vperm.xlu0 %484, %v254_v7   ;;  %v253_v8 = vld [vmem:[%s595_s6] sm:$0xff] }
   0x5   :  { %v431_v9 = vld [vmem:[%s596_s3] ss:$0 sm:$0xff]  ;;  %467 = vmatprep.subr.mxu0 %v487_v16  ;;  %471 = vmatprep.mubr.msk.f32.mxu0 %vm488_vm3, %v487_v16 }
   0x6   :  { %460 = vmatprep.subr.mxu1 %v441_v5  ;;  %v435_v19 = vld [vmem:[%s598_s4] ss:$0 sm:$0xff] }
   0x7   :  { %461 = vmatpush3.msra.mxu1 %v441_v5  ;;  %v269_v29 = vld [vmem:[%s599_s7] sm:$0xff] }
   0x8   :  { %462 = vmatprep.subr.mxu1 %v440_v4  ;;  %257 = vperm.xlu0 %484, %v253_v8   ;;  %v344_v30 = vld [vmem:[%s597_s2] sm:$0xff] }
   0x9   :  { %463 = vmatpush3.msra.mxu1 %v440_v4  ;;  %v140_v31 = vld [vmem:[%s600_s8] sm:$0xff] }
   0xa   :  { %474 = vmatprep.subr.mxu1 %v487_v16  ;;  %144 = vperm.xlu1 %485, %v140_v31   ;;  %v432_v32 = vld [vmem:[%s601_s9] ss:$0 sm:$0xff] }
  0x7f   :  { %v263_v18 = vpop.permute.xlu0 %262 }
  0x83   :  { %v258_v25 = vpop.permute.xlu0 %257 }
  0x85   :  { %v145_v33 = vpop.permute.xlu1 %144 }
  0x86   :  { %v153_v35 = vmul.f32 %v432_v32, %v145_v33 }
  0x88   :  { %155 = vst.msk [vmem:[#allocation3] sm:$0xff] %vm154_vm4, %v153_v35 }
  0x8f   :  { %v343_v37 = vld [vmem:[#allocation3] sm:$0xff] }
  0xc4   :  { %v459_v10 = vpop.f32.mrf.mxu0 }
  0xc5   :  { %v136_v11 = vmul.f32 %v459_v10, %v431_v9 }
  0xc6   :  { %v119_v12 = vpop.f32.mrf.mxu0 }
  0xc7   :  { %139 = vst.msk [vmem:[#allocation2 + $0x8] sm:$0xff] %vm137_vm2, %v136_v11  ;;  %v135_v13 = vmul.f32 %v431_v9, %v119_v12 }
  0xc9   :  { %138 = vst.msk [vmem:[#allocation2] sm:$0xff] %vm137_vm2, %v135_v13 }
  0xce   :  { %v161_v15 = vld [vmem:[#allocation2 + $0x8] sm:$0xff] }
  0xd0   :  { %v160_v14 = vld [vmem:[#allocation2] sm:$0xff] }
  0xd1   :  { %464 = vmatprep.mubr.msk.f32.mxu1 %vm137_vm2, %v160_v14 }
  0xd2   :  { %465 = vmatmul.mubr.msk.f32.vlgmr.msra.gmra.mxu1 %vm137_vm2, %v161_v15 }
  0xd3   :  { %478 = vmatprep.mubr.msk.f32.mxu1 %vm488_vm3, %v487_v16  ;;  %475 = vmatpush3.msra.mxu1 %v345_v17 }
  0xd4   :  { %476 = vmatprep.subr.mxu1 %v487_v16 }
  0xd5   :  { %477 = vmatpush3.msra.mxu1 %v344_v30 }
 0x192   :  { %v466_v20 = vpop.f32.mrf.mxu1 }
 0x193   :  { %v252_v21 = vmul.f32 %v466_v20, %v435_v19 }
 0x194   :  { %v235_v22 = vpop.f32.mrf.mxu1 }
 0x195   :  { %v266_v23 = vadd.f32 %v263_v18, %v252_v21  ;;  %v251_v24 = vmul.f32 %v435_v19, %v235_v22 }
 0x197   :  { %v268_v26 = vmax.f32 %v266_v23, 0.0  ;;  %v265_v27 = vadd.f32 %v258_v25, %v251_v24 }
 0x199   :  { %v267_v28 = vmax.f32 %v265_v27, 0.0  ;;  %468 = vmatpush3.msra.mxu0 %v268_v26 }
 0x19a   :  { %469 = vmatprep.subr.mxu0 %v487_v16 }
 0x19b   :  { %470 = vmatpush3.msra.mxu0 %v267_v28 }
 0x19c   :  { %472 = vmatmul.mubr.msk.f32.vlgmr.msra.gmra.mxu0 %vm137_vm2, %v269_v29 }
 0x25c   :  { %v339_v34 = vpop.f32.mrf.mxu0 }
 0x25d   :  { %479 = vmatmul.mubr.msk.f32.vlgmr.msra.gmra.mxu1 %vm137_vm2, %v339_v34 }
 0x25e   :  { %v473_v36 = vpop.f32.mrf.mxu0 }
 0x31d   :  { %v415_v38 = vpop.f32.mrf.mxu1 }
 0x31e   :  { %v419_v39 = vadd.f32 %v415_v38, %v343_v37 }
 0x31f   :  { %v480_v40 = vpop.f32.mrf.mxu1 }
 0x320   :  { %421 = vst.msk [vmem:[#allocation3] sm:$0xff] %vm154_vm4, %v419_v39 }
 0x327   :  { %v422_v41 = vld [vmem:[#allocation3] sm:$0xff] }
 0x328   :  { %423 = vst.msk [vmem:[%s602_s10] sm:$0xff] %vm154_vm4, %v422_v41 }

</bundles_post_ra>
